<compile_context>
chip_gen: v6e
topology: v6e:2x2x1
jax: 0.10.0
libtpu: 0.0.40
codegen_flags: <defaults>
</compile_context>

<pallas_src>
import jax
import jax.numpy as jnp
from jax.experimental import pallas as pl
from jax.experimental.pallas import tpu as pltpu

_LANE = 128              # lane width: last-dim padding target
_SUBLANE = 8             # f32 sublane granularity
_MAX_TM = 512            # batch-tile rows (>=512 amortizes per-step overhead)
_PAD_BIAS = -1e9         # bias of padded logit columns -> exp() underflows to 0
_VMEM_LIMIT = 32 * 1024 * 1024   # scoped VMEM request (safe on v5e/v6e/v7x)
_VMEM_BUDGET = 24 * 1024 * 1024  # what the tile plan is allowed to use


def _round_up(n, m):
    return ((n + m - 1) // m) * m


# ----------------------------------------------------------------------------
# Kernel: 3-layer MLP + log-softmax fused; one batch tile per grid step.
# ----------------------------------------------------------------------------
def _mlp_logsoftmax_kernel(x_ref, w1_ref, b1_ref, w2_ref, b2_ref,
                           w3_ref, b3_ref, o_ref):
    cdt = w1_ref.dtype  # bf16 MXU-operand dtype (weights pre-cast at prep time)

    # Layer 1: Linear + ReLU  (bf16 operands, f32 MXU accumulation)
    h1 = jnp.dot(x_ref[...].astype(cdt), w1_ref[...],
                 preferred_element_type=jnp.float32) + b1_ref[...]
    h1 = jnp.maximum(h1, 0.0)

    # Layer 2: Linear + ReLU
    h2 = jnp.dot(h1.astype(cdt), w2_ref[...],
                 preferred_element_type=jnp.float32) + b2_ref[...]
    h2 = jnp.maximum(h2, 0.0)

    # Layer 3: Linear (padded output columns carry a -1e9 bias)
    z = jnp.dot(h2.astype(cdt), w3_ref[...],
                preferred_element_type=jnp.float32) + b3_ref[...]

    # Numerically stable log-softmax over the feature (lane) axis, all in f32.
    m = jnp.max(z, axis=1, keepdims=True)
    lse = m + jnp.log(jnp.sum(jnp.exp(z - m), axis=1, keepdims=True))
    o_ref[...] = (z - lse).astype(o_ref.dtype)


# ----------------------------------------------------------------------------
# One-time parameter repacking (NOT in the per-call forward path).
# ----------------------------------------------------------------------------
def prepare_params(params, compute_dtype=jnp.bfloat16):
    """Repack PyTorch-layout params {W*: (out,in), b*: (out,)} for the kernel:
       transpose to (in,out), pad feature dims to multiples of 128, cast matmul
       operands to `compute_dtype`, keep biases f32 as (1, N_pad) rows."""
    W1, b1 = params["W1"], params["b1"]
    W2, b2 = params["W2"], params["b2"]
    W3, b3 = params["W3"], params["b3"]

    in_dim = W1.shape[1]
    hid = W1.shape[0]
    out = W3.shape[0]
    hid_p = _round_up(hid, _LANE)
    out_p = _round_up(out, _LANE)

    def pad2(a, rows, cols):
        return jnp.pad(a, ((0, rows - a.shape[0]), (0, cols - a.shape[1])))

    w1 = pad2(W1.T, in_dim, hid_p).astype(compute_dtype)
    w2 = pad2(W2.T, hid_p, hid_p).astype(compute_dtype)
    w3 = pad2(W3.T, hid_p, out_p).astype(compute_dtype)

    b1p = jnp.pad(b1, (0, hid_p - hid)).reshape(1, hid_p).astype(jnp.float32)
    b2p = jnp.pad(b2, (0, hid_p - hid)).reshape(1, hid_p).astype(jnp.float32)
    b3p = jnp.pad(b3, (0, out_p - out),
                  constant_values=_PAD_BIAS).reshape(1, out_p).astype(jnp.float32)

    return dict(w1=w1, b1=b1p, w2=w2, b2=b2p, w3=w3, b3=b3p, out_dim=out)


def _choose_tm(batch, in_dim, out_p, resident_bytes):
    """Pick a batch tile that amortizes per-step overhead but keeps
    (weights, counted twice to be conservative) + 2x x-tile + 2x out-tile
    under the VMEM budget (re-derived per shape -> also valid on v7x)."""
    tm = min(_MAX_TM, _round_up(max(batch, 1), _SUBLANE))
    while tm > _SUBLANE:
        need = 2 * resident_bytes + 2 * tm * in_dim * 4 + 2 * tm * out_p * 4
        if need <= _VMEM_BUDGET:
            break
        tm = max(_SUBLANE, _round_up(tm // 2, _SUBLANE))
    return tm


# ----------------------------------------------------------------------------
# Forward wrapper (call with params already prepared by prepare_params).
# ----------------------------------------------------------------------------
def linear_model_forward(x, prep):
    """x: (B, input_dim) f32. prep: output of prepare_params."""
    B, in_dim = x.shape
    out_p = prep["w3"].shape[1]
    out_dim = prep["out_dim"]

    resident_arrays = (prep["w1"], prep["b1"], prep["w2"], prep["b2"],
                       prep["w3"], prep["b3"])
    resident_bytes = sum(a.size * a.dtype.itemsize for a in resident_arrays)

    TM = _choose_tm(B, in_dim, out_p, resident_bytes)
    B_pad = _round_up(B, TM)
    if B_pad != B:
        x = jnp.pad(x, ((0, B_pad - B), (0, 0)))

    # Weights/biases: constant block index across the grid -> DMA'd once,
    # stay VMEM-resident for every batch tile.
    def resident(a):
        return pl.BlockSpec(a.shape, lambda i: (0, 0))

    out_full = pl.pallas_call(
        _mlp_logsoftmax_kernel,
        out_shape=jax.ShapeDtypeStruct((B_pad, out_p), jnp.float32),
        grid=(B_pad // TM,),
        in_specs=[
            pl.BlockSpec((TM, in_dim), lambda i: (i, 0)),   # batch-tiled x
            resident(prep["w1"]), resident(prep["b1"]),
            resident(prep["w2"]), resident(prep["b2"]),
            resident(prep["w3"]), resident(prep["b3"]),
        ],
        out_specs=pl.BlockSpec((TM, out_p), lambda i: (i, 0)),  # lane-dense out
        compiler_params=pltpu.CompilerParams(
            dimension_semantics=("parallel",),      # shard batch across v7x TCs
            vmem_limit_bytes=_VMEM_LIMIT,
        ),
    )(x, *resident_arrays)

    # Drop padded batch rows and padded logit columns.
    return out_full[:B, :out_dim]


# ----------------------------------------------------------------------------
# Init + references
# ----------------------------------------------------------------------------
def init_params(key, input_dim, hidden_dim, output_dim):
    """Deterministic init mimicking torch.nn.Linear default (uniform ±1/sqrt(fan_in)),
    in the PyTorch layout W: (out_features, in_features), b: (out_features,)."""
    ks = jax.random.split(key, 6)

    def linear(kw, kb, fan_in, fan_out):
        bound = 1.0 / jnp.sqrt(fan_in)
        W = jax.random.uniform(kw, (fan_out, fan_in), jnp.float32, -bound, bound)
        b = jax.random.uniform(kb, (fan_out,), jnp.float32, -bound, bound)
        return W, b

    W1, b1 = linear(ks[0], ks[1], input_dim, hidden_dim)
    W2, b2 = linear(ks[2], ks[3], hidden_dim, hidden_dim)
    W3, b3 = linear(ks[4], ks[5], hidden_dim, output_dim)
    return dict(W1=W1, b1=b1, W2=W2, b2=b2, W3=W3, b3=b3)


def _reference_f32(x, p):
    h1 = jnp.maximum(x @ p["W1"].T + p["b1"], 0.0)
    h2 = jnp.maximum(h1 @ p["W2"].T + p["b2"], 0.0)
    z = h2 @ p["W3"].T + p["b3"]
    return jax.nn.log_softmax(z, axis=1)


def _reference_matched(x, p, cdt=jnp.bfloat16):
    """Same math as the kernel: bf16 matmul operands, f32 accumulation/epilogue."""
    def lin(h, W, b):
        return jnp.dot(h.astype(cdt), W.T.astype(cdt),
                       preferred_element_type=jnp.float32) + b
    h1 = jnp.maximum(lin(x, p["W1"], p["b1"]), 0.0)
    h2 = jnp.maximum(lin(h1, p["W2"], p["b2"]), 0.0)
    z = lin(h2, p["W3"], p["b3"])
    return jax.nn.log_softmax(z, axis=1)


if __name__ == "__main__":
    key = jax.random.PRNGKey(0)
    k_x, k_p = jax.random.split(key)

    batch, input_dim, hidden_dim, output_dim = 8, 32, 64, 16
    x = jax.random.normal(k_x, (batch, input_dim), jnp.float32)
    params = init_params(k_p, input_dim, hidden_dim, output_dim)

    prep = prepare_params(params)            # one-time repack (outside fwd path)
    out = linear_model_forward(x, prep)
    out = jax.block_until_ready(out)

    assert out.shape == (batch, output_dim)

    # Tight check vs a reference that uses the same bf16-operand math.
    ref_m = _reference_matched(x, params)
    assert jnp.allclose(out, ref_m, atol=1e-3, rtol=1e-3), "mismatch vs matched ref"

    # Loose sanity check vs the pure-f32 PyTorch-equivalent reference.
    ref_f = _reference_f32(x, params)
    assert jnp.allclose(out, ref_f, atol=1e-1, rtol=1e-1), "mismatch vs f32 ref"

    print("KERNEL_OK")
</pallas_src>

<mosaic_0001>
module attributes {stable_mosaic.version = 11 : i64} {
  func.func @_mlp_logsoftmax_kernel(%arg0: i32, %arg1: memref<8x32xf32, #tpu.memory_space<vmem>>, %arg2: memref<32x128xbf16, #tpu.memory_space<vmem>>, %arg3: memref<1x128xf32, #tpu.memory_space<vmem>>, %arg4: memref<128x128xbf16, #tpu.memory_space<vmem>>, %arg5: memref<1x128xf32, #tpu.memory_space<vmem>>, %arg6: memref<128x128xbf16, #tpu.memory_space<vmem>>, %arg7: memref<1x128xf32, #tpu.memory_space<vmem>>, %arg8: memref<8x128xf32, #tpu.memory_space<vmem>>) attributes {dimension_semantics = [#tpu.dimension_semantics<parallel>], iteration_bounds = array<i64: 1>, scalar_prefetch = 0 : i64, scratch_operands = 0 : i64, tpu.core_type = #tpu.core_type<tc>, window_params = [{transform_indices = @transform_0, window_bounds = array<i64: 8, 32>}, {pipeline_mode = #tpu.pipeline_mode<synchronous>, transform_indices = @transform_1, window_bounds = array<i64: 32, 128>}, {pipeline_mode = #tpu.pipeline_mode<synchronous>, transform_indices = @transform_2, window_bounds = array<i64: 1, 128>}, {pipeline_mode = #tpu.pipeline_mode<synchronous>, transform_indices = @transform_3, window_bounds = array<i64: 128, 128>}, {pipeline_mode = #tpu.pipeline_mode<synchronous>, transform_indices = @transform_4, window_bounds = array<i64: 1, 128>}, {pipeline_mode = #tpu.pipeline_mode<synchronous>, transform_indices = @transform_5, window_bounds = array<i64: 128, 128>}, {pipeline_mode = #tpu.pipeline_mode<synchronous>, transform_indices = @transform_6, window_bounds = array<i64: 1, 128>}, {transform_indices = @transform_7, window_bounds = array<i64: 8, 128>}]} {
    %c0 = arith.constant 0 : index
    %c0_0 = arith.constant 0 : index
    %0 = vector.load %arg1[%c0, %c0_0] : memref<8x32xf32, #tpu.memory_space<vmem>>, vector<8x32xf32>
    %1 = arith.truncf %0 : vector<8x32xf32> to vector<8x32xbf16>
    %c0_1 = arith.constant 0 : index
    %c0_2 = arith.constant 0 : index
    %2 = vector.load %arg2[%c0_1, %c0_2] : memref<32x128xbf16, #tpu.memory_space<vmem>>, vector<32x128xbf16>
    %cst = arith.constant dense<0.000000e+00> : vector<8x128xf32>
    %3 = tpu.matmul %1, %2, %cst {dimension_numbers = #tpu.dot_dimension_numbers<[1], [0], [0], [1], [0, 0, 1, 1], [], []>} : vector<8x32xbf16>, vector<32x128xbf16>, vector<8x128xf32> -> vector<8x128xf32>
    %c0_3 = arith.constant 0 : index
    %c0_4 = arith.constant 0 : index
    %4 = vector.load %arg3[%c0_3, %c0_4] : memref<1x128xf32, #tpu.memory_space<vmem>>, vector<1x128xf32>
    %5 = vector.broadcast %4 : vector<1x128xf32> to vector<8x128xf32>
    %6 = arith.addf %3, %5 : vector<8x128xf32>
    %cst_5 = arith.constant 0.000000e+00 : f32
    %7 = vector.broadcast %cst_5 : f32 to vector<8x128xf32>
    %8 = arith.maximumf %6, %7 : vector<8x128xf32>
    %9 = arith.truncf %8 : vector<8x128xf32> to vector<8x128xbf16>
    %c0_6 = arith.constant 0 : index
    %c0_7 = arith.constant 0 : index
    %10 = vector.load %arg4[%c0_6, %c0_7] : memref<128x128xbf16, #tpu.memory_space<vmem>>, vector<128x128xbf16>
    %cst_8 = arith.constant dense<0.000000e+00> : vector<8x128xf32>
    %11 = tpu.matmul %9, %10, %cst_8 {dimension_numbers = #tpu.dot_dimension_numbers<[1], [0], [0], [1], [0, 0, 1, 1], [], []>} : vector<8x128xbf16>, vector<128x128xbf16>, vector<8x128xf32> -> vector<8x128xf32>
    %c0_9 = arith.constant 0 : index
    %c0_10 = arith.constant 0 : index
    %12 = vector.load %arg5[%c0_9, %c0_10] : memref<1x128xf32, #tpu.memory_space<vmem>>, vector<1x128xf32>
    %13 = vector.broadcast %12 : vector<1x128xf32> to vector<8x128xf32>
    %14 = arith.addf %11, %13 : vector<8x128xf32>
    %cst_11 = arith.constant 0.000000e+00 : f32
    %15 = vector.broadcast %cst_11 : f32 to vector<8x128xf32>
    %16 = arith.maximumf %14, %15 : vector<8x128xf32>
    %17 = arith.truncf %16 : vector<8x128xf32> to vector<8x128xbf16>
    %c0_12 = arith.constant 0 : index
    %c0_13 = arith.constant 0 : index
    %18 = vector.load %arg6[%c0_12, %c0_13] : memref<128x128xbf16, #tpu.memory_space<vmem>>, vector<128x128xbf16>
    %cst_14 = arith.constant dense<0.000000e+00> : vector<8x128xf32>
    %19 = tpu.matmul %17, %18, %cst_14 {dimension_numbers = #tpu.dot_dimension_numbers<[1], [0], [0], [1], [0, 0, 1, 1], [], []>} : vector<8x128xbf16>, vector<128x128xbf16>, vector<8x128xf32> -> vector<8x128xf32>
    %c0_15 = arith.constant 0 : index
    %c0_16 = arith.constant 0 : index
    %20 = vector.load %arg7[%c0_15, %c0_16] : memref<1x128xf32, #tpu.memory_space<vmem>>, vector<1x128xf32>
    %21 = vector.broadcast %20 : vector<1x128xf32> to vector<8x128xf32>
    %22 = arith.addf %19, %21 : vector<8x128xf32>
    %cst_17 = arith.constant dense<0xFF800000> : vector<8xf32>
    %23 = vector.multi_reduction <maximumf>, %22, %cst_17 [1] : vector<8x128xf32> to vector<8xf32>
    %24 = vector.shape_cast %23 : vector<8xf32> to vector<8x1xf32>
    %25 = vector.broadcast %24 : vector<8x1xf32> to vector<8x128xf32>
    %26 = arith.subf %22, %25 : vector<8x128xf32>
    %27 = math.exp %26 : vector<8x128xf32>
    %cst_18 = arith.constant dense<0.000000e+00> : vector<8xf32>
    %28 = vector.multi_reduction <add>, %27, %cst_18 [1] : vector<8x128xf32> to vector<8xf32>
    %29 = vector.shape_cast %28 : vector<8xf32> to vector<8x1xf32>
    %30 = math.log %29 : vector<8x1xf32>
    %31 = arith.addf %24, %30 : vector<8x1xf32>
    %32 = vector.broadcast %31 : vector<8x1xf32> to vector<8x128xf32>
    %33 = arith.subf %22, %32 : vector<8x128xf32>
    %c0_19 = arith.constant 0 : index
    %c0_20 = arith.constant 0 : index
    %34 = vector.load %arg8[%c0_19, %c0_20] : memref<8x128xf32, #tpu.memory_space<vmem>>, vector<8x128xf32>
    tpu.vector_store %arg8[%c0_19, %c0_20], %33 {strides = array<i32>} : memref<8x128xf32, #tpu.memory_space<vmem>>, vector<8x128xf32>,
    return
  }
  func.func @transform_0(%arg0: i32) -> (i32, i32) {
    %c0_i32 = arith.constant 0 : i32
    %c0_i32_0 = arith.constant 0 : i32
    return %arg0, %c0_i32 : i32, i32
  }
  func.func @transform_1(%arg0: i32) -> (i32, i32) {
    %c0_i32 = arith.constant 0 : i32
    %c0_i32_0 = arith.constant 0 : i32
    %c0_i32_1 = arith.constant 0 : i32
    return %c0_i32, %c0_i32_0 : i32, i32
  }
  func.func @transform_2(%arg0: i32) -> (i32, i32) {
    %c0_i32 = arith.constant 0 : i32
    %c0_i32_0 = arith.constant 0 : i32
    %c0_i32_1 = arith.constant 0 : i32
    return %c0_i32, %c0_i32_0 : i32, i32
  }
  func.func @transform_3(%arg0: i32) -> (i32, i32) {
    %c0_i32 = arith.constant 0 : i32
    %c0_i32_0 = arith.constant 0 : i32
    %c0_i32_1 = arith.constant 0 : i32
    return %c0_i32, %c0_i32_0 : i32, i32
  }
  func.func @transform_4(%arg0: i32) -> (i32, i32) {
    %c0_i32 = arith.constant 0 : i32
    %c0_i32_0 = arith.constant 0 : i32
    %c0_i32_1 = arith.constant 0 : i32
    return %c0_i32, %c0_i32_0 : i32, i32
  }
  func.func @transform_5(%arg0: i32) -> (i32, i32) {
    %c0_i32 = arith.constant 0 : i32
    %c0_i32_0 = arith.constant 0 : i32
    %c0_i32_1 = arith.constant 0 : i32
    return %c0_i32, %c0_i32_0 : i32, i32
  }
  func.func @transform_6(%arg0: i32) -> (i32, i32) {
    %c0_i32 = arith.constant 0 : i32
    %c0_i32_0 = arith.constant 0 : i32
    %c0_i32_1 = arith.constant 0 : i32
    return %c0_i32, %c0_i32_0 : i32, i32
  }
  func.func @transform_7(%arg0: i32) -> (i32, i32) {
    %c0_i32 = arith.constant 0 : i32
    %c0_i32_0 = arith.constant 0 : i32
    return %arg0, %c0_i32 : i32, i32
  }
}

</mosaic_0001>

<bundles_post_ra>
// kernel: tpu_custom_call.1
= control target key start
LH: loop header
LB: loop body
LE: loop exit
PB: predicated region body
PF: predicated region fallthrough
CT: control target
= control target key end

     0   :  { %12 = vsyncpa [#allocation3], 0  ;;  %s741_s0 = inlined_call_operand.hbm [shape: f32[8,32], index: 0, kind: input, shape index: {}]   ;;  %s742_s1 = inlined_call_operand.hbm [shape: bf16[32,128], index: 1, kind: input, shape index: {}]   ;;  %s743_s2 = inlined_call_operand.vmem [shape: f32[1,128], index: 2, kind: input, shape index: {}]   ;;  %s744_s3 = inlined_call_operand.hbm [shape: bf16[128,128], index: 3, kind: input, shape index: {}]   ;;  %s745_s4 = inlined_call_operand.vmem [shape: f32[1,128], index: 4, kind: input, shape index: {}]   ;;  %s746_s5 = inlined_call_operand.hbm [shape: bf16[128,128], index: 5, kind: input, shape index: {}]   ;;  %s747_s6 = inlined_call_operand.vmem [shape: f32[1,128], index: 6, kind: input, shape index: {}]   ;;  %s748_s7 = inlined_call_operand.hbm [shape: f32[8,128], index: 7, kind: output, shape index: {}]  }
   0x1   :  { %13 = vsyncpa [#allocation6], 0 }
   0x2   :  { %14 = vsyncpa [#allocation9], 0 }
   0x3   :  { %15 = vsyncpa [#allocation4], 0  ;;  %s635_s24 = smov [#allocation5]  }
   0x4   :  { %s31_s25 = sshll.u32 %s635_s24, 4  ;;  %s32_s25 = int_to_ptr.vmem [resolvable:$true] %s31_s25 }
   0x5   :  { %s535_s26 = scalar_lea.vmem %s32_s25, 256  ;;  %p540_p1 = scmp.lt.s32.totalorder %s32_s25, %s32_s25 }
   0x6   :  { %p536_p0 = scmp.ne.s32.totalorder %s32_s25, %s535_s26  ;;  %p541_p2 = scmp.lt.s32.totalorder %s535_s26, %s535_s26 }
   0x8   :  { %p542_p3 = por %p541_p2, %p540_p1 }
   0xa   :  { %p543_p4 = pnand %p542_p3, %p536_p0 }
   0xc   :  { %546 = shalt.err (!%p543_p4)
}
   0xd   :  { %s636_s27 = smov 64   ;;  %s637_s28 = smov 4  }
   0xe   :  { %37 = dma.hbm_to_vmem [thread:$0]  %s742_s1, 256, %s32_s25, [#allocation6], %s636_s27, %s636_s27, %s637_s28  }
   0xf   :  { %s638_s8 = smov [#allocation2]   ;;  %s639_s10 = smov [#allocation7]  }
  0x10   :  { %s22_s9 = sshll.u32 %s638_s8, 4  ;;  %s45_s11 = sshll.u32 %s639_s10, 4  ;;  %s23_s9 = int_to_ptr.vmem [resolvable:$true] %s22_s9  ;;  %s46_s11 = int_to_ptr.vmem [resolvable:$true] %s45_s11 }
  0x11   :  { %s555_s12 = scalar_lea.vmem %s23_s9, 128  ;;  %p560_p6 = scmp.lt.s32.totalorder %s23_s9, %s23_s9 }
  0x12   :  { %p556_p5 = scmp.ne.s32.totalorder %s23_s9, %s555_s12  ;;  %p561_p7 = scmp.lt.s32.totalorder %s555_s12, %s555_s12 }
  0x14   :  { %p562_p8 = por %p561_p7, %p560_p6 }
  0x16   :  { %p563_p9 = pnand %p562_p8, %p556_p5 }
  0x18   :  { %566 = shalt.err (!%p563_p9)
}
  0x19   :  { %25 = dma.hbm_to_vmem [thread:$0]  %s741_s0, 128, %s23_s9, [#allocation3]  }
  0x1a   :  { %s575_s15 = scalar_lea.vmem %s46_s11, 1024  ;;  %p580_p11 = scmp.lt.s32.totalorder %s46_s11, %s46_s11 }
  0x1b   :  { %p576_p10 = scmp.ne.s32.totalorder %s46_s11, %s575_s15  ;;  %p581_p12 = scmp.lt.s32.totalorder %s575_s15, %s575_s15 }
  0x1d   :  { %p582_p13 = por %p581_p12, %p580_p11 }
  0x1f   :  { %p583_p0 = pnand %p582_p13, %p576_p10 }
  0x21   :  { %586 = shalt.err (!%p583_p0)
}
  0x22   :  { %51 = dma.hbm_to_vmem [thread:$0]  %s744_s3, 1024, %s46_s11, [#allocation6], %s636_s27, %s636_s27, %s637_s28  }
  0x23   :  { %s640_s17 = smov [#allocation8]  }
  0x24   :  { %s59_s18 = sshll.u32 %s640_s17, 4  ;;  %s60_s18 = int_to_ptr.vmem [resolvable:$true] %s59_s18 }
  0x25   :  { %s595_s19 = scalar_lea.vmem %s60_s18, 1024  ;;  %p600_p2 = scmp.lt.s32.totalorder %s60_s18, %s60_s18 }
  0x26   :  { %p596_p1 = scmp.ne.s32.totalorder %s60_s18, %s595_s19  ;;  %p601_p3 = scmp.lt.s32.totalorder %s595_s19, %s595_s19 }
  0x28   :  { %p602_p4 = por %p601_p3, %p600_p2 }
  0x2a   :  { %p603_p5 = pnand %p602_p4, %p596_p1 }
  0x2c   :  { %606 = shalt.err (!%p603_p5)
}
  0x2d   :  { %65 = dma.hbm_to_vmem [thread:$0]  %s746_s5, 1024, %s60_s18, [#allocation9], %s636_s27, %s636_s27, %s637_s28  }
  0x2e   :  { %627 = dma.done.wait [#allocation3], 128  }
  0x2f   :  { %628 = vsyncadd [#allocation3], 4294967168 }
  0x30   :  { %629 = dma.done.wait [#allocation6], 1280  }
  0x31   :  { %630 = vsyncadd [#allocation6], 4294966016 }
  0x32   :  { %631 = dma.done.wait [#allocation9], 1024  }
  0x33   :  { %632 = vsyncadd [#allocation9], 4294966272  ;;  %v641_v0 = vmov 0.0   ;;  %vm642_vm0 = vmmov 0   ;;  %v505_v1 = vld [vmem:[#allocation5 + $0x8] sm:$0xff]   ;;  %v506_v2 = vld [vmem:[#allocation5] sm:$0xff]  }
  0x34   :  { %448 = vmatprep.subr.bf16.mxu0 %v641_v0  ;;  %452 = vmatprep.mubr.msk.bf16.mxu0 %vm642_vm0, %v641_v0  ;;  %v81_v3 = vld [vmem:[#allocation2] sm:$0xff]  ;;  %v507_v4 = vld [vmem:[#allocation7 + $0x38] sm:$0xff]   ;;  %v508_v6 = vld [vmem:[#allocation7 + $0x30] sm:$0xff]   ;;  %vm106_vm1 = vcmask 261120  }
  0x35   :  { %456 = vmatprep.subr.bf16.mxu1 %v641_v0  ;;  %472 = vmatprep.mubr.msk.bf16.mxu1 %vm642_vm0, %v641_v0  ;;  %v82_v5 = vpack.c.bf16 %v81_v3, %v81_v3  ;;  %v509_v7 = vld [vmem:[#allocation7 + $0x28] sm:$0xff]   ;;  %v510_v8 = vld [vmem:[#allocation7 + $0x20] sm:$0xff]   ;;  %v511_v9 = vld [vmem:[#allocation7 + $0x18] sm:$0xff]  }
  0x36   :  { %449 = vmatpush3.bf16.msra.mxu0 %v505_v1  ;;  %457 = vmatpush3.bf16.msra.mxu1 %v507_v4  ;;  %v512_v10 = vld [vmem:[#allocation7 + $0x10] sm:$0xff]   ;;  %v513_v11 = vld [vmem:[#allocation7 + $0x8] sm:$0xff]   ;;  %v514_v12 = vld [vmem:[#allocation7] sm:$0xff]  }
  0x37   :  { %450 = vmatprep.subr.bf16.mxu0 %v641_v0  ;;  %458 = vmatprep.subr.bf16.mxu1 %v641_v0  ;;  %v515_v13 = vld [vmem:[#allocation8 + $0x38] sm:$0xff]   ;;  %v516_v14 = vld [vmem:[#allocation8 + $0x30] sm:$0xff]   ;;  %v517_v15 = vld [vmem:[#allocation8 + $0x28] sm:$0xff]  }
  0x38   :  { %v518_v16 = vld [vmem:[#allocation8 + $0x20] sm:$0xff]   ;;  %v519_v17 = vld [vmem:[#allocation8 + $0x18] sm:$0xff]   ;;  %v520_v18 = vld [vmem:[#allocation8 + $0x10] sm:$0xff]  }
  0x39   :  { %v405_v19 = vld [vmem:[%s743_s2] ss:$0 sm:$0xff]  ;;  %v522_v28 = vld [vmem:[#allocation8] sm:$0xff]  }
  0x3a   :  { %451 = vmatpush3.bf16.msra.mxu0 %v506_v2  ;;  %459 = vmatpush3.bf16.msra.mxu1 %v508_v6  ;;  %v521_v27 = vld [vmem:[#allocation8 + $0x8] sm:$0xff]  }
  0x3b   :  { %476 = vmatprep.subr.bf16.mxu0 %v641_v0  ;;  %460 = vmatprep.subr.bf16.mxu1 %v641_v0  ;;  %v409_v29 = vld [vmem:[%s745_s4] ss:$0 sm:$0xff]  ;;  %s643_s4 = smov [#allocation10]  }
  0x3c   :  { %v418_v37 = vld [vmem:[%s747_s6] ss:$0 sm:$0xff]  ;;  %s394_s24 = sshll.u32 %s643_s4, 4  ;;  %s395_s24 = int_to_ptr.vmem [resolvable:$true] %s394_s24 }
  0x3d   :  { %453 = vmatmul.mubr.msk.bf16.vlgmr.msra.gmra.mxu0 %vm106_vm1, %v82_v5  ;;  %s607_s6 = scalar_lea.vmem %s395_s24, 128  ;;  %p612_p7 = scmp.lt.s32.totalorder %s395_s24, %s395_s24 }
  0x3e   :  { %492 = vmatprep.mubr.msk.bf16.mxu0 %vm642_vm0, %v641_v0  ;;  %461 = vmatpush3.bf16.msra.mxu1 %v509_v7  ;;  %p608_p6 = scmp.ne.s32.totalorder %s395_s24, %s607_s6  ;;  %p613_p8 = scmp.lt.s32.totalorder %s607_s6, %s607_s6 }
  0x3f   :  { %462 = vmatprep.subr.bf16.mxu1 %v641_v0  ;;  %477 = vmatpush3.bf16.msra.mxu0 %v515_v13 }
  0x40   :  { %478 = vmatprep.subr.bf16.mxu0 %v641_v0  ;;  %p614_p9 = por %p613_p8, %p612_p7 }
  0x42   :  { %463 = vmatpush3.bf16.msra.mxu1 %v510_v8  ;;  %p615_p10 = pnand %p614_p9, %p608_p6 }
  0x43   :  { %464 = vmatprep.subr.bf16.mxu1 %v641_v0  ;;  %479 = vmatpush3.bf16.msra.mxu0 %v516_v14 }
  0x44   :  { %480 = vmatprep.subr.bf16.mxu0 %v641_v0 }
  0x46   :  { %465 = vmatpush3.bf16.msra.mxu1 %v511_v9 }
  0x47   :  { %466 = vmatprep.subr.bf16.mxu1 %v641_v0  ;;  %481 = vmatpush3.bf16.msra.mxu0 %v517_v15 }
  0x48   :  { %482 = vmatprep.subr.bf16.mxu0 %v641_v0 }
  0x4a   :  { %467 = vmatpush3.bf16.msra.mxu1 %v512_v10 }
  0x4b   :  { %468 = vmatprep.subr.bf16.mxu1 %v641_v0  ;;  %483 = vmatpush3.bf16.msra.mxu0 %v518_v16 }
  0x4c   :  { %484 = vmatprep.subr.bf16.mxu0 %v641_v0 }
  0x4e   :  { %469 = vmatpush3.bf16.msra.mxu1 %v513_v11 }
  0x4f   :  { %470 = vmatprep.subr.bf16.mxu1 %v641_v0  ;;  %485 = vmatpush3.bf16.msra.mxu0 %v519_v17 }
  0x50   :  { %486 = vmatprep.subr.bf16.mxu0 %v641_v0 }
  0x52   :  { %471 = vmatpush3.bf16.msra.mxu1 %v514_v12 }
  0x53   :  { %487 = vmatpush3.bf16.msra.mxu0 %v520_v18 }
  0x54   :  { %488 = vmatprep.subr.bf16.mxu0 %v641_v0 }
  0x57   :  { %489 = vmatpush3.bf16.msra.mxu0 %v521_v27 }
  0x58   :  { %490 = vmatprep.subr.bf16.mxu0 %v641_v0 }
  0x5b   :  { %491 = vmatpush3.bf16.msra.mxu0 %v522_v28 }
  0xfd   :  { %v144_v20 = vpop.f32.mrf.mxu0 }
  0xfe   :  { %v145_v21 = vadd.f32 %v405_v19, %v144_v20 }
  0xff   :  { %v454_v22 = vpop.f32.mrf.mxu0 }
 0x100   :  { %v150_v23 = vmax.f32 %v145_v21, 0.0 }
 0x101   :  { %v147_v24 = vpop.f32.mrf.mxu0 }
 0x102   :  { %v151_v25 = vpack.c.bf16 %v150_v23, %v150_v23 }
 0x103   :  { %v455_v26 = vpop.f32.mrf.mxu0 }
 0x104   :  { %473 = vmatmul.mubr.bf16.vlgmr.msra.gmra.mxu1 %v151_v25 }
 0x1c4   :  { %v257_v30 = vpop.f32.mrf.mxu1 }
 0x1c5   :  { %v258_v31 = vadd.f32 %v409_v29, %v257_v30 }
 0x1c6   :  { %v474_v32 = vpop.f32.mrf.mxu1 }
 0x1c7   :  { %v263_v33 = vmax.f32 %v258_v31, 0.0 }
 0x1c8   :  { %v260_v34 = vpop.f32.mrf.mxu1 }
 0x1c9   :  { %v264_v35 = vpack.c.bf16 %v263_v33, %v263_v33 }
 0x1ca   :  { %v475_v36 = vpop.f32.mrf.mxu1 }
 0x1cb   :  { %493 = vmatmul.mubr.bf16.vlgmr.msra.gmra.mxu0 %v264_v35 }
 0x28b   :  { %v370_v38 = vpop.f32.mrf.mxu0 }
 0x28c   :  { %v371_v39 = vadd.f32 %v418_v37, %v370_v38 }
 0x28d   :  { %v494_v40 = vpop.f32.mrf.mxu0 }
 0x28e   :  { %376 = vmax.xlane.f32.xlu0 %v371_v39 }
 0x28f   :  { %v373_v41 = vpop.f32.mrf.mxu0 }
 0x291   :  { %v495_v42 = vpop.f32.mrf.mxu0 }
 0x317   :  { %v377_v43 = vpop.xlane.xlu0 %376 }
 0x318   :  { %v378_v44 = vsub.f32 %v371_v39, %v377_v43 }
 0x31a   :  { %v379_v45 = vmul.f32 1.442695, %v378_v44 }
 0x31c   :  { %523 = vpow2.f32 %v379_v45 }
 0x329   :  { %v524_v46 = vpop.eup %523 }
 0x32a   :  { %381 = vadd.xlane.f32.xlu0 %v524_v46 }
 0x3b3   :  { %v382_v47 = vpop.xlane.xlu0 %381 }
 0x3b4   :  { %525 = vlog2.f32 %v382_v47 }
 0x3c1   :  { %v526_v48 = vpop.eup %525 }
 0x3c2   :  { %v384_v49 = vmul.f32 0.6931472, %v526_v48 }
 0x3c4   :  { %v385_v50 = vadd.f32 %v384_v49, %v377_v43 }
 0x3c6   :  { %v386_v51 = vsub.f32 %v371_v39, %v385_v50 }
 0x3c8   :  { %387 = vst [vmem:[#allocation10] sm:$0xff] %v386_v51 }
 0x3c9   :  { %618 = shalt.err (!%p615_p10)
}
 0x3ca   :  { %397 = dma.vmem_to_hbm [thread:$0]  %s395_s24, 128, %s748_s7, [#allocation4]  }
 0x3cb   :  { %633 = dma.done.wait [#allocation4], 128  }
 0x3cc   :  { %634 = vsyncadd [#allocation4], 4294967168 }
 0x3cd   :  { %401 = vsyncpa [#allocation3], 1 }
 0x3ce   :  { %402 = vsyncpa [#allocation6], 1 }
 0x3cf   :  { %403 = vsyncpa [#allocation9], 1 }
 0x3d0   :  { %404 = vsyncpa [#allocation4], 1 }

</bundles_post_ra>
